<compile_context>
chip_gen: v7x
topology: tpu7x:2x2x1
jax: 0.10.0
libtpu: 0.0.40
codegen_flags: <defaults>
</compile_context>

<pallas_src>
import functools

import jax
import jax.numpy as jnp
from jax.experimental import pallas as pl
from jax.experimental.pallas import tpu as pltpu

_VMEM = pl.BlockSpec(memory_space=pltpu.MemorySpace.VMEM)
_LANE = 128


def _round_up(x, m):
    return (x + m - 1) // m * m


def _vmem_limit_bytes():
    """Generation-aware scoped-VMEM limit: half of physical, capped at 64 MiB.

    v7x (64 MiB physical) -> 32 MiB limit; v5e/v6e (128 MiB) -> 64 MiB limit.
    """
    cap = 128 * 1024 * 1024
    try:
        info = pltpu.get_tpu_info()
        cap = int(getattr(info, "vmem_capacity_bytes", cap))
    except Exception:
        pass
    return int(min(64 * 1024 * 1024, max(cap // 2, 16 * 1024 * 1024)))


def _pick_hw_tile(hw_pad, c, f, vmem_budget_bytes):
    """Largest multiple-of-128 divisor of hw_pad whose working set fits ~half the budget.

    Per 128-lane group the kernel holds: the f32 intermediate y (4*F bytes/lane) plus the
    double-buffered f32 input tile (2*4*C bytes/lane).
    """
    m = hw_pad // _LANE
    bytes_per_lane = 4 * f + 2 * 4 * c
    max_lanes = max(_LANE, (vmem_budget_bytes // 2) // bytes_per_lane)
    best = _LANE
    for d in range(1, m + 1):
        if m % d == 0 and d * _LANE <= max_lanes:
            best = d * _LANE
    return best


# ----------------------------------------------------------------------------
# Kernel 1: backbone stand-in = 1x1 conv (over channels) + ReLU + global avg pool
#   grid = (B, HW_pad // hw_tile); spatial axis is the reduction ("arbitrary") axis.
# ----------------------------------------------------------------------------
def backbone_kernel(x_ref, w_ref, o_ref, acc_ref, *, inv_hw, use_mxu):
    # x_ref:   (C, hw_tile) f32   (one batch element, one spatial tile)
    # w_ref:   (F, C)       f32
    # o_ref:   (1, F)       f32   (pooled feature row, lane-dense)
    # acc_ref: (F, 128)     f32   (GAP partial sums, lives across spatial tiles)
    k = pl.program_id(1)

    @pl.when(k == 0)
    def _():
        acc_ref[...] = jnp.zeros_like(acc_ref)

    x = x_ref[...]
    w = w_ref[...]
    if use_mxu:
        # TODO(synk): for a real large-C trunk, tile C as an extra 'arbitrary' grid axis
        # and use bf16 operands with f32 accumulation.
        y = jnp.dot(w, x, preferred_element_type=jnp.float32)
    else:
        # Tiny C: a K=C MXU matmul runs at ~C/256 of peak, so do C broadcasted FMAs on
        # the VPU instead (the VALU slot has plenty of slack here).
        y = w[:, 0:1] * x[0:1, :]
        for c in range(1, x.shape[0]):
            y = y + w[:, c:c + 1] * x[c:c + 1, :]
    y = jnp.maximum(y, 0.0)  # ReLU (VPU)

    # Partial GAP on the VPU: fold the hw_tile lanes into one 128-lane group with
    # lane-aligned vreg adds (no MXU pushes, no long XLU reduce per step).
    n = y.shape[-1] // _LANE
    part = y[:, 0:_LANE]
    for i in range(1, n):
        part = part + y[:, i * _LANE:(i + 1) * _LANE]
    acc_ref[...] += part

    @pl.when(k == pl.num_programs(1) - 1)
    def _():
        # One tiny ones-matmul folds the remaining 128 lanes -> lane-dense (1, F) row.
        ones_row = jnp.ones((1, _LANE), jnp.float32)
        pooled = jax.lax.dot_general(
            ones_row, acc_ref[...], (((1,), (1,)), ((), ())),
            preferred_element_type=jnp.float32)
        o_ref[...] = pooled * inv_hw


# ----------------------------------------------------------------------------
# Kernel 2: Linear(F -> E_pad) + BatchNorm1d with batch statistics (train mode)
#   Single step over the full batch (BN needs full-batch statistics).
#   Linear bias omitted: train-mode BN subtracts the batch mean, so it cancels exactly.
# ----------------------------------------------------------------------------
def head_kernel(f_ref, w_ref, g_ref, b_ref, o_ref):
    # f_ref: (B, F) f32  w_ref: (F, E_pad) f32  g/b: (1, E_pad) f32  o_ref: (B, E_pad) f32
    eps = 1e-5
    z = jnp.dot(f_ref[...], w_ref[...], preferred_element_type=jnp.float32)
    mu = jnp.mean(z, axis=0, keepdims=True)
    zc = z - mu
    var = jnp.mean(zc * zc, axis=0, keepdims=True)  # biased var (PyTorch BN normalization)
    o_ref[...] = zc * jax.lax.rsqrt(var + eps) * g_ref[...] + b_ref[...]
    # TODO(synk): if B*F ever exceeds ~8-16 MiB, tile this kernel over E_pad (full-B blocks
    # so the batch statistics stay exact) and use bf16 matmul operands with f32 accumulation.


def prepare_encoder_params(raw):
    """One-time parameter prep: pad the head to a lane-dense (multiple-of-128) width.

    Hoisted out of the forward so the zero/pad ops don't run on every call.  The Linear
    bias is intentionally dropped: it cancels exactly under train-mode BatchNorm1d.
    """
    lin_w = raw["lin_w_t"]                          # (F, E)
    F, E = lin_w.shape
    E_pad = _round_up(E, _LANE)
    w_pad = jnp.zeros((F, E_pad), jnp.float32).at[:, :E].set(lin_w)
    g_pad = jnp.zeros((1, E_pad), jnp.float32).at[:, :E].set(raw["gamma"])
    b_pad = jnp.zeros((1, E_pad), jnp.float32).at[:, :E].set(raw["beta"])
    return {"conv_w": raw["conv_w"], "lin_w_pad": w_pad,
            "gamma_pad": g_pad, "beta_pad": b_pad, "embed_size": E}


def encoder_cnn_forward(images, params):
    """images: (B, C, H, W) float32 NCHW -> (B, embed_size) float32."""
    B, C, H, W = images.shape
    HW = H * W
    w_conv = params["conv_w"]                       # (F, C) f32
    F = w_conv.shape[0]

    vmem_limit = _vmem_limit_bytes()

    # NCHW -> (B, C, H*W) is a free reshape (no transpose); keep native f32 -- the kernel
    # reads it directly (no separate wrapper-side cast pass over HBM).
    HW_pad = _round_up(HW, _LANE)
    x = images.reshape(B, C, HW)
    if HW_pad != HW:
        # Zero-pad the spatial axis to a lane-dense width; ReLU(conv(0)) = 0, so the GAP
        # sum is unchanged (inv_hw stays 1/HW).
        x = jnp.pad(x, ((0, 0), (0, 0), (0, HW_pad - HW)))

    hw_tile = _pick_hw_tile(HW_pad, C, F, vmem_limit)
    n_k = HW_pad // hw_tile
    use_mxu = C >= 16  # tiny-K matmuls waste the MXU; use VPU FMAs instead

    backbone_cost = pl.CostEstimate(
        flops=2 * B * HW_pad * C * F + 2 * B * HW_pad * F + 2 * B * F * _LANE,
        transcendentals=0,
        bytes_accessed=B * C * HW_pad * 4 + F * C * 4 + B * F * 4,
    )
    # Note: the weight BlockSpec has a constant index map; Pallas keeps it VMEM-resident.
    # (pipeline_mode=pl.Buffered(1) would shave one F*C buffer on v7x if F grows large.)
    # TODO(synk): for B==1 inference on v7x, split the spatial reduction into two parallel
    # half-range partial sums so both TensorCores stay busy.
    feats = pl.pallas_call(
        functools.partial(backbone_kernel, inv_hw=1.0 / HW, use_mxu=use_mxu),
        out_shape=jax.ShapeDtypeStruct((B, 1, F), jnp.float32),
        grid=(B, n_k),
        in_specs=[
            pl.BlockSpec((None, C, hw_tile), lambda b, k: (b, 0, k)),
            pl.BlockSpec((F, C), lambda b, k: (0, 0)),
        ],
        out_specs=pl.BlockSpec((None, 1, F), lambda b, k: (b, 0, 0)),
        scratch_shapes=[pltpu.VMEM((F, _LANE), jnp.float32)],
        compiler_params=pltpu.CompilerParams(
            dimension_semantics=("parallel", "arbitrary"),
            vmem_limit_bytes=vmem_limit,
        ),
        cost_estimate=backbone_cost,
    )(x, w_conv)
    feats = feats.reshape(B, F)                     # (B, 1, F) -> (B, F): free, F stays on lanes

    E = params["embed_size"]
    w_pad = params["lin_w_pad"]
    E_pad = w_pad.shape[1]

    head_cost = pl.CostEstimate(
        flops=2 * B * F * E_pad + 8 * B * E_pad,
        transcendentals=0,
        bytes_accessed=B * F * 4 + F * E_pad * 4 + 2 * E_pad * 4 + B * E_pad * 4,
    )
    out_pad = pl.pallas_call(
        head_kernel,
        out_shape=jax.ShapeDtypeStruct((B, E_pad), jnp.float32),
        in_specs=[_VMEM] * 4,
        out_specs=_VMEM,
        compiler_params=pltpu.CompilerParams(vmem_limit_bytes=vmem_limit),
        cost_estimate=head_cost,
    )(feats, w_pad, params["gamma_pad"], params["beta_pad"])
    return out_pad[:, :E]


def _reference(images, raw):
    B, C, H, W = images.shape
    x = images.reshape(B, C, H * W)
    w = raw["conv_w"]                                           # (F, C) f32
    y = jnp.maximum(jnp.einsum("fc,bcs->bfs", w, x), 0.0)       # (B, F, H*W)
    feats = jnp.mean(y, axis=-1)                                # (B, F)
    # PyTorch applies the Linear bias; it cancels exactly under train-mode BatchNorm.
    z = feats @ raw["lin_w_t"] + raw["lin_b"]
    mu = z.mean(axis=0, keepdims=True)
    var = ((z - mu) ** 2).mean(axis=0, keepdims=True)
    return (z - mu) / jnp.sqrt(var + 1e-5) * raw["gamma"] + raw["beta"]


if __name__ == "__main__":
    # small synthetic shapes consistent with the forward pass
    B, C_in, H, W = 2, 4, 16, 16       # images (NCHW)
    F = 128                            # backbone feature dim (stand-in for 2048)
    E = 32                             # embed_size

    key = jax.random.PRNGKey(0)
    k_img, k_conv, k_w, k_b = jax.random.split(key, 4)

    images = jax.random.normal(k_img, (B, C_in, H, W), dtype=jnp.float32)

    raw_params = {
        # backbone stand-in 1x1 conv weight, stored transposed (F, C_in), f32
        "conv_w": 0.1 * jax.random.normal(k_conv, (F, C_in), dtype=jnp.float32),
        # Linear weight stored pre-transposed: (F, E)  (PyTorch stores (E, F))
        "lin_w_t": 0.05 * jax.random.normal(k_w, (F, E), dtype=jnp.float32),
        "lin_b": 0.01 * jax.random.normal(k_b, (1, E), dtype=jnp.float32),  # cancels under BN
        "gamma": jnp.ones((1, E), dtype=jnp.float32),   # BatchNorm1d weight init
        "beta": jnp.zeros((1, E), dtype=jnp.float32),   # BatchNorm1d bias init
    }

    params = prepare_encoder_params(raw_params)   # one-time prep (padding hoisted out of forward)

    out = jax.block_until_ready(encoder_cnn_forward(images, params))
    ref = _reference(images, raw_params)

    assert out.shape == (B, E) and out.dtype == jnp.float32
    assert jnp.allclose(out, ref, atol=1e-3, rtol=1e-3), "mismatch vs reference"
    print("KERNEL_OK")
</pallas_src>

<mosaic_0001>
module attributes {stable_mosaic.version = 11 : i64} {
  func.func @backbone_kernel(%arg0: i32, %arg1: i32, %arg2: memref<1x4x256xf32, #tpu.memory_space<vmem>>, %arg3: memref<128x4xf32, #tpu.memory_space<vmem>>, %arg4: memref<1x1x128xf32, #tpu.memory_space<vmem>>, %arg5: memref<128x128xf32, #tpu.memory_space<vmem>>) attributes {dimension_semantics = [#tpu.dimension_semantics<parallel>, #tpu.dimension_semantics<arbitrary>], iteration_bounds = array<i64: 2, 1>, scalar_prefetch = 0 : i64, scratch_operands = 1 : i64, tpu.core_type = #tpu.core_type<tc>, window_params = [{transform_indices = @transform_0, window_bounds = array<i64: 1, 4, 256>}, {pipeline_mode = #tpu.pipeline_mode<synchronous>, transform_indices = @transform_1, window_bounds = array<i64: 128, 4>}, {transform_indices = @transform_2, window_bounds = array<i64: 1, 1, 128>}]} {
    %c0_i32 = arith.constant 0 : i32
    %0 = arith.cmpi eq, %arg1, %c0_i32 : i32
    %1 = arith.extui %0 : i1 to i32
    %c0_i32_0 = arith.constant 0 : i32
    %2 = arith.cmpi ne, %1, %c0_i32_0 : i32
    scf.if %2 {
      %cst_11 = arith.constant 0.000000e+00 : f32
      %40 = vector.broadcast %cst_11 : f32 to vector<128x128xf32>
      %c0_12 = arith.constant 0 : index
      %c0_13 = arith.constant 0 : index
      %41 = vector.load %arg5[%c0_12, %c0_13] : memref<128x128xf32, #tpu.memory_space<vmem>>, vector<128x128xf32>
      tpu.vector_store %arg5[%c0_12, %c0_13], %40 {strides = array<i32>} : memref<128x128xf32, #tpu.memory_space<vmem>>, vector<128x128xf32>,
    } else {
    }
    %c0 = arith.constant 0 : index
    %c0_1 = arith.constant 0 : index
    %c0_2 = arith.constant 0 : index
    %3 = vector.load %arg2[%c0, %c0_1, %c0_2] : memref<1x4x256xf32, #tpu.memory_space<vmem>>, vector<1x4x256xf32>
    %4 = vector.shape_cast %3 : vector<1x4x256xf32> to vector<4x256xf32>
    %c0_3 = arith.constant 0 : index
    %c0_4 = arith.constant 0 : index
    %5 = vector.load %arg3[%c0_3, %c0_4] : memref<128x4xf32, #tpu.memory_space<vmem>>, vector<128x4xf32>
    %6 = vector.extract_strided_slice %5 {offsets = [0, 0], sizes = [128, 1], strides = [1, 1]} : vector<128x4xf32> to vector<128x1xf32>
    %7 = vector.extract_strided_slice %4 {offsets = [0, 0], sizes = [1, 256], strides = [1, 1]} : vector<4x256xf32> to vector<1x256xf32>
    %8 = vector.broadcast %6 : vector<128x1xf32> to vector<128x256xf32>
    %9 = vector.broadcast %7 : vector<1x256xf32> to vector<128x256xf32>
    %10 = arith.mulf %8, %9 : vector<128x256xf32>
    %11 = vector.extract_strided_slice %5 {offsets = [0, 1], sizes = [128, 1], strides = [1, 1]} : vector<128x4xf32> to vector<128x1xf32>
    %12 = vector.extract_strided_slice %4 {offsets = [1, 0], sizes = [1, 256], strides = [1, 1]} : vector<4x256xf32> to vector<1x256xf32>
    %13 = vector.broadcast %11 : vector<128x1xf32> to vector<128x256xf32>
    %14 = vector.broadcast %12 : vector<1x256xf32> to vector<128x256xf32>
    %15 = arith.mulf %13, %14 : vector<128x256xf32>
    %16 = arith.addf %10, %15 : vector<128x256xf32>
    %17 = vector.extract_strided_slice %5 {offsets = [0, 2], sizes = [128, 1], strides = [1, 1]} : vector<128x4xf32> to vector<128x1xf32>
    %18 = vector.extract_strided_slice %4 {offsets = [2, 0], sizes = [1, 256], strides = [1, 1]} : vector<4x256xf32> to vector<1x256xf32>
    %19 = vector.broadcast %17 : vector<128x1xf32> to vector<128x256xf32>
    %20 = vector.broadcast %18 : vector<1x256xf32> to vector<128x256xf32>
    %21 = arith.mulf %19, %20 : vector<128x256xf32>
    %22 = arith.addf %16, %21 : vector<128x256xf32>
    %23 = vector.extract_strided_slice %5 {offsets = [0, 3], sizes = [128, 1], strides = [1, 1]} : vector<128x4xf32> to vector<128x1xf32>
    %24 = vector.extract_strided_slice %4 {offsets = [3, 0], sizes = [1, 256], strides = [1, 1]} : vector<4x256xf32> to vector<1x256xf32>
    %25 = vector.broadcast %23 : vector<128x1xf32> to vector<128x256xf32>
    %26 = vector.broadcast %24 : vector<1x256xf32> to vector<128x256xf32>
    %27 = arith.mulf %25, %26 : vector<128x256xf32>
    %28 = arith.addf %22, %27 : vector<128x256xf32>
    %cst = arith.constant 0.000000e+00 : f32
    %29 = vector.broadcast %cst : f32 to vector<128x256xf32>
    %30 = arith.maximumf %28, %29 : vector<128x256xf32>
    %31 = vector.extract_strided_slice %30 {offsets = [0, 0], sizes = [128, 128], strides = [1, 1]} : vector<128x256xf32> to vector<128x128xf32>
    %32 = vector.extract_strided_slice %30 {offsets = [0, 128], sizes = [128, 128], strides = [1, 1]} : vector<128x256xf32> to vector<128x128xf32>
    %33 = arith.addf %31, %32 : vector<128x128xf32>
    %c0_5 = arith.constant 0 : index
    %c0_6 = arith.constant 0 : index
    %34 = vector.load %arg5[%c0_5, %c0_6] : memref<128x128xf32, #tpu.memory_space<vmem>>, vector<128x128xf32>
    %35 = arith.addf %34, %33 : vector<128x128xf32>
    %c0_7 = arith.constant 0 : index
    %c0_8 = arith.constant 0 : index
    %36 = vector.load %arg5[%c0_7, %c0_8] : memref<128x128xf32, #tpu.memory_space<vmem>>, vector<128x128xf32>
    tpu.vector_store %arg5[%c0_7, %c0_8], %35 {strides = array<i32>} : memref<128x128xf32, #tpu.memory_space<vmem>>, vector<128x128xf32>,
    %c0_i32_9 = arith.constant 0 : i32
    %37 = arith.cmpi eq, %arg1, %c0_i32_9 : i32
    %38 = arith.extui %37 : i1 to i32
    %c0_i32_10 = arith.constant 0 : i32
    %39 = arith.cmpi ne, %38, %c0_i32_10 : i32
    scf.if %39 {
      %cst_11 = arith.constant 1.000000e+00 : f32
      %40 = vector.broadcast %cst_11 : f32 to vector<1x128xf32>
      %c0_12 = arith.constant 0 : index
      %c0_13 = arith.constant 0 : index
      %41 = vector.load %arg5[%c0_12, %c0_13] : memref<128x128xf32, #tpu.memory_space<vmem>>, vector<128x128xf32>
      %cst_14 = arith.constant dense<0.000000e+00> : vector<1x128xf32>
      %42 = tpu.matmul %40, %41, %cst_14 {dimension_numbers = #tpu.dot_dimension_numbers<[1], [1], [0], [0], [0, 0, 1, 0], [], []>} : vector<1x128xf32>, vector<128x128xf32>, vector<1x128xf32> -> vector<1x128xf32>
      %cst_15 = arith.constant 3.906250e-03 : f32
      %43 = vector.broadcast %cst_15 : f32 to vector<1x128xf32>
      %44 = arith.mulf %42, %43 : vector<1x128xf32>
      %c0_16 = arith.constant 0 : index
      %c0_17 = arith.constant 0 : index
      %c0_18 = arith.constant 0 : index
      %45 = vector.load %arg4[%c0_16, %c0_17, %c0_18] : memref<1x1x128xf32, #tpu.memory_space<vmem>>, vector<1x1x128xf32>
      %46 = vector.shape_cast %45 : vector<1x1x128xf32> to vector<1x128xf32>
      %47 = vector.shape_cast %44 : vector<1x128xf32> to vector<1x1x128xf32>
      tpu.vector_store %arg4[%c0_16, %c0_17, %c0_18], %47 {strides = array<i32>} : memref<1x1x128xf32, #tpu.memory_space<vmem>>, vector<1x1x128xf32>,
    } else {
    }
    return
  }
  func.func @transform_0(%arg0: i32, %arg1: i32) -> (i32, i32, i32) {
    %c0_i32 = arith.constant 0 : i32
    %c0_i32_0 = arith.constant 0 : i32
    return %arg0, %c0_i32, %arg1 : i32, i32, i32
  }
  func.func @transform_1(%arg0: i32, %arg1: i32) -> (i32, i32) {
    %c0_i32 = arith.constant 0 : i32
    %c0_i32_0 = arith.constant 0 : i32
    %c0_i32_1 = arith.constant 0 : i32
    return %c0_i32, %c0_i32_0 : i32, i32
  }
  func.func @transform_2(%arg0: i32, %arg1: i32) -> (i32, i32, i32) {
    %c0_i32 = arith.constant 0 : i32
    %c0_i32_0 = arith.constant 0 : i32
    %c0_i32_1 = arith.constant 0 : i32
    return %arg0, %c0_i32, %c0_i32_0 : i32, i32, i32
  }
}

</mosaic_0001>

<bundles_post_ra>
// kernel: tpu_custom_call.1
= control target key start
LH: loop header
LB: loop body
LE: loop exit
PB: predicated region body
PF: predicated region fallthrough
CT: control target
= control target key end

     0   :  { %7 = vsyncpa [#allocation4], 0  ;;  %s1974_s0 = inlined_call_operand.hbm [shape: f32[2,4,256], index: 0, kind: input, shape index: {}]   ;;  %s1975_s1 = inlined_call_operand.hbm [shape: f32[128,4], index: 1, kind: input, shape index: {}]   ;;  %s1976_s2 = inlined_call_operand.hbm [shape: f32[2,1,128], index: 2, kind: output, shape index: {}]  }
   0x1   :  { %9 = vsyncpa [#allocation4 + $0x1], 0 }
   0x2   :  { %10 = vsyncpa [#allocation7], 0 }
   0x3   :  { %11 = vsyncpa [#allocation5], 0 }
   0x4   :  { %13 = vsyncpa [#allocation5 + $0x1], 0  ;;  %s1472_s9 = smov 0   ;;  %s1474_s10 = smov 0  }
   0x5   :  { %s1476_s11 = smov 0   ;;  %s1478_s12 = smov 0  }
   0x6   :  { %s1480_s13 = smov 0   ;;  %s1482_s14 = smov 0  }
   0x7 LB: > { %s1084_s15 = sadd.s32 4294967295, %s1442_s14   ;;  %s1085_s16 = sadd.s32 4294967294, %s1442_s14   ;;  %s1442_s14 = sphi %s1482_s14, %s19_s14   ;;  %s1438_s13 = sphi %s1480_s13, %s2000_s13   ;;  %s1434_s12 = sphi %s1478_s12, %s1999_s12   ;;  %s1430_s11 = sphi %s1476_s11, %s1998_s11   ;;  %s1426_s10 = sphi %s1474_s10, %s1997_s10   ;;  %s1422_s9 = sphi %s1472_s9, %s1996_s9  }
   0x8   : > { %p53_p0 = scmp.ne.s32.totalorder %s1426_s10, %s1422_s9  ;;  %p1506_p1 = scmp.eq.s32.totalorder %s1084_s15, 0 }
   0x9   : > { %p1510_p2 = scmp.eq.s32.totalorder %s1084_s15, 1  ;;  %p104_p3 = scmp.eq.s32.totalorder %s1085_s16, 1 }
   0xa   : > { %s1981_s17 = scalar_select %p1506_p1, 1, 0 }
   0xb   : > { %s1982_s18 = scalar_select %p1510_p2, 1, 0 }
   0xc   : > { %p1516_p4 = por %p1506_p1, %p53_p0  ;;  %p1086_p5 = scmp.ge.s32.totalorder %s1442_s14, 1 }
   0xd   : > { %p1521_p6 = por %p104_p3, %p53_p0  ;;  %p111_p7 = scmp.lt.s32.totalorder %s1442_s14, 3 }
   0xe   : > { %s1983_s19 = scalar_select %p1516_p4, 1, 0 }
   0xf   : > { %s1984_s20 = scalar_select %p1521_p6, 1, 0 }
  0x10   : > { %p1526_p8 = pnand %p1086_p5, %p111_p7  ;;  %s1444_s22 = smov [#allocation6]  }
  0x11   : > { %s123_s23 = sshll.u32 %s1444_s22, 4  ;;  %s31_s25 = sadd.s32 1, %s1438_s13  ;;  %s124_s23 = int_to_ptr.vmem [resolvable:$true] %s123_s23 }
  0x12   : > { %s1985_s21 = scalar_select %p1526_p8, 1, 0 }
  0x13   : > { %p1183_p9 = pneg %p1526_p8  ;;  %s1298_s28 = scalar_lea.hbm %s1975_s1, 2048 }
  0x14   : > { %p1299_p12 = scmp.ne.s32.totalorder %s1975_s1, %s1298_s28  ;;  %p1305_p5 = scmp.lt.u32.totalorder %s1298_s28, %s1975_s1 }
  0x15   : > { %p1535_p11 = pnand %p1183_p9, %p1506_p1 }
  0x17   : > { %p1300_p13 = pneg %p1535_p11 }
  0x19   : > { %p1301_p0 = pnand %p1300_p13, %p1299_p12 }
  0x1b   : > { %p1302_p3 = pneg %p1301_p0 }
  0x1d   : > { %p1307_p7 = pnand %p1305_p5, %p1302_p3 }
  0x1f   : > { %1310 = shalt.err (!%p1307_p7)
}
  0x20   : > { %s1311_s5 = scalar_lea.vmem %s124_s23, 2048  ;;  %p1319_p1 = scmp.lt.s32.totalorder %s124_s23, %s124_s23 }
  0x21   : > { %p1312_p9 = scmp.ne.s32.totalorder %s124_s23, %s1311_s5  ;;  %p1320_p4 = scmp.lt.s32.totalorder %s1311_s5, %s1311_s5 }
  0x23   : > { %p1314_p10 = pnand %p1312_p9, %p1300_p13  ;;  %p1321_p8 = por %p1320_p4, %p1319_p1 }
  0x25   : > { %p1315_p6 = pneg %p1314_p10 }
  0x27   : > { %p1322_p2 = pnand %p1321_p8, %p1315_p6 }
  0x29   : > { %1325 = shalt.err (!%p1322_p2)
}
  0x2a   : > { %s1445_s6 = smov 128   ;;  %s1446_s7 = smov 8  }
  0x2b   : > { %1186 = dma.hbm_to_vmem [thread:$0]  (!%p1535_p11), %s1975_s1, 2048, %s124_s23, [#allocation7], %s1445_s6, %s1445_s6, %s1446_s7  }
  0x2c   : > { %p33_p1 = scmp.ge.s32.totalorder %s31_s25, 2  ;;  %s40_s16 = sadd.s32 1, %s1430_s11 }
  0x2d   : > { %p47_p2 = scmp.ne.s32.totalorder %s1430_s11, %s1426_s10  ;;  %p48_p4 = scmp.eq.s32.totalorder %s1442_s14, 0 }
  0x2e   : > { %s2002_s25 = smov (%p33_p1, %s31_s25), 0  ;;  %p1988_p8 = scmp.ne.s32.totalorder %s1982_s18, 0 }
  0x2f   : > { %p1562_p6 = por %p48_p4, %p47_p2  ;;  %s35_s24 = ssub.s32 %s1438_s13, %s2002_s25 }
  0x30   : > { %p1568_p10 = por %p1988_p8, %p47_p2  ;;  %p1196_p12 = scmp.lt.s32.totalorder %s1442_s14, 2 }
  0x31   : > { %p38_p11 = scmp.eq.s32.totalorder %s35_s24, 0  ;;  %s137_s23 = sand.u32 1, %s1430_s11  }
  0x32   : > { %s1089_s27 = sshll.u32 %s137_s23, 3  ;;  %s1098_s29 = sshll.u32 %s1438_s13, 7 }
  0x33   : > { %s1577_s28 = scalar_select %p38_p11, %s1430_s11, %s40_s16  }
  0x34   : > { %s1583_s4 = scalar_lea.hbm %s1974_s0, %s1098_s29  ;;  %s141_s18 = scalar_lea.vmem [#allocation3], %s1089_s27 }
  0x35   : > { %s151_s5 = sshll.u32 %s141_s18, 4  ;;  %p1589_p13 = pnand %p1196_p12, %p1562_p6  ;;  %s1585_s5 = int_to_ptr.vmem [resolvable:$true] %s151_s5 }
  0x36   : > { %s138_s7 = scalar_lea.sflag [#allocation4], %s137_s23  ;;  %s1326_s8 = scalar_lea.hbm %s1583_s4, 128 }
  0x37   : > { %p1327_p0 = scmp.ne.s32.totalorder %s1583_s4, %s1326_s8  ;;  %p1328_p3 = pneg %p1589_p13 }
  0x38   : > { %s1331_s24 = scalar_lea.hbm %s1974_s0, 256  ;;  %p1332_p9 = scmp.lt.u32.totalorder %s1583_s4, %s1974_s0 }
  0x39   : > { %p1329_p5 = pnand %p1328_p3, %p1327_p0  ;;  %p1333_p1 = scmp.lt.u32.totalorder %s1331_s24, %s1326_s8 }
  0x3a   : > { %p1335_p4 = scmp.lt.u32.totalorder %s1326_s8, %s1583_s4 }
  0x3b   : > { %p1330_p7 = pneg %p1329_p5  ;;  %p1334_p2 = por %p1333_p1, %p1332_p9 }
  0x3d   : > { %p1336_p6 = por %p1335_p4, %p1334_p2 }
  0x3f   : > { %p1337_p8 = pnand %p1336_p6, %p1330_p7 }
  0x41   : > { %1340 = shalt.err (!%p1337_p8)
}
  0x42   : > { %s1341_s23 = scalar_lea.vmem %s1585_s5, 128  ;;  %s1447_s29 = smov [#allocation3]  }
  0x43   : > { %p1342_p12 = scmp.ne.s32.totalorder %s1585_s5, %s1341_s23  ;;  %s1346_s30 = sshll.u32 %s1447_s29, 4  ;;  %s1347_s30 = int_to_ptr.vmem [resolvable:$false] %s1346_s30 }
  0x44   : > { %s1348_s3 = scalar_lea.vmem %s1347_s30, 256  ;;  %p1349_p5 = scmp.lt.s32.totalorder %s1585_s5, %s1347_s30 }
  0x45   : > { %p1344_p11 = pnand %p1342_p12, %p1328_p3  ;;  %p1350_p9 = scmp.lt.s32.totalorder %s1348_s3, %s1341_s23 }
  0x47   : > { %p1345_p0 = pneg %p1344_p11  ;;  %p1351_p1 = por %p1350_p9, %p1349_p5 }
  0x49   : > { %p1352_p2 = pnand %p1351_p1, %p1345_p0 }
  0x4b   : > { %1355 = shalt.err (!%p1352_p2)
}
  0x4c   : > { %1190 = dma.hbm_to_vmem [thread:$0]  (!%p1589_p13), %s1583_s4, 128, %s1585_s5, %s138_s7  }
  0x4d   : > { %p1991_p7 = scmp.ne.s32.totalorder %s1985_s21, 0 }
  0x4e   : > { %s1621_s18 = sand.u32 (!%p1991_p7), 1, %s1426_s10   ;;  %p1992_p3 = scmp.ne.s32.totalorder (!%p1991_p7), %s1983_s19, 0 }
  0x4f   : > { %160 = sbr.rel (%p1991_p7) target bundleno = 659 (0x293), region = 28  ;;  %s1093_s8 = sshll.u32 (!%p1991_p7), %s1621_s18, 3 }
  0x50   : > { %s163_s15 = scalar_lea.sflag (!%p1991_p7), [#allocation4], %s1621_s18  ;;  %s1625_s16 = scalar_lea.vmem (!%p1991_p7), [#allocation3], %s1093_s8 }
  0x56   : > { %1409 = dma.done.wait (%p1992_p3), %s163_s15, 128  }
  0x57   : > { %1411 = vsyncadd (%p1992_p3), %s163_s15, 4294967168  ;;  %p1993_p13 = scmp.ne.s32.totalorder %s1981_s17, 0 }
  0x59   : > { %1413 = dma.done.wait (%p1993_p13), [#allocation7], 2048  }
  0x5a   : > { %1415 = vsyncadd (%p1993_p13), [#allocation7], 4294965248  ;;  %v1448_v0 = vmov 2   ;;  %v1449_v1 = vmov 1   ;;  %v212_v2 = vld [vmem:[#allocation6] sm:$0xff]  ;;  %v215_v3 = vld [vmem:[#allocation6 + $0x18] sm:$0xff]  ;;  %v309_v30 = vlaneseq }
  0x5b   : > { %1259 = vset.pattern.permute.xlu0 %v1448_v0  ;;  %1258 = vset.pattern.permute.xlu1 %v1449_v1  ;;  %v213_v4 = vld [vmem:[#allocation6 + $0x8] sm:$0xff]  ;;  %v1450_v5 = vmov 3   ;;  %v216_v6 = vld [vmem:[#allocation6 + $0x20] sm:$0xff]  ;;  %v219_v7 = vld [vmem:[#allocation6 + $0x38] sm:$0xff]  ;;  %v1451_v9 = vmov 0   ;;  %v1452_v14 = vmov 0.0|0.0  }
  0x5c   : > { %506 = vperm.xlu0 %1259, %v212_v2   ;;  %360 = vperm.xlu1 %1258, %v212_v2   ;;  %v214_v8 = vld [vmem:[#allocation6 + $0x10] sm:$0xff]  ;;  %v217_v10 = vld [vmem:[#allocation6 + $0x28] sm:$0xff]  ;;  %v1643_v11 = vld [vmem:[#allocation6 + $0x40] sm:$0xff]  ;;  %v310_v32 = vshrl.u32 %v309_v30, 7  ;;  %vm1453_vm0 = vmmov 0   ;;  %s1095_s17 = sshll.u32 %s1434_s12, 4 }
  0x5d   : > { %v1646_v12 = vld [vmem:[#allocation6 + $0x58] sm:$0xff]  ;;  %v222_v13 = vld [vmem:[#allocation6 + $0x50] sm:$0xff]  ;;  %1151 = vmatprep.subr.bf16.mxu0 %v1452_v14  ;;  %v1656_v15 = vld [vmem:[#allocation6 + $0x68] sm:$0xff]  ;;  %s189_s19 = scalar_lea.vmem [#allocation8], %s1621_s18  ;;  %s1925_s6 = scalar_lea.hbm %s1976_s2, %s1095_s17 }
  0x5e   : > { %v218_v16 = vld [vmem:[#allocation6 + $0x30] sm:$0xff]  ;;  %v221_v17 = vld [vmem:[#allocation6 + $0x48] sm:$0xff]  ;;  %v1661_v18 = vld [vmem:[#allocation6 + $0x60] sm:$0xff]  ;;  %v425_v35 = vsub.s32 1, %v310_v32  ;;  %v429_v36 = vsub.s32 5, %v310_v32  ;;  %v571_v39 = vsub.s32 2, %v310_v32 }
  0x5f   : > { %v1668_v19 = vld [vmem:[#allocation6 + $0x70] sm:$0xff]  ;;  %v1674_v20 = vld [vmem:[#allocation6 + $0x78] sm:$0xff]  ;;  %v575_v40 = vsub.s32 6, %v310_v32  ;;  %v717_v42 = vsub.s32 3, %v310_v32  ;;  %v721_v43 = vsub.s32 7, %v310_v32  ;;  %v311_v44 = vsub.s32 0, %v310_v32 }
  0x60   : > { %518 = vperm.xlu0 %1259, %v215_v3   ;;  %364 = vperm.xlu1 %1258, %v213_v4   ;;  %v211_v38 = vld [vmem:[%s1625_s16] sm:$0xff]  ;;  %v315_v45 = vsub.s32 4, %v310_v32  ;;  %s997_s21 = sshll.u32 %s189_s19, 4  ;;  %s985_s7 = scalar_lea.sflag [#allocation5], %s1621_s18  ;;  %s1927_s21 = int_to_ptr.vmem [resolvable:$true] %s997_s21 }
  0x61   : > { %v426_v46 = vrot.slane %v211_v38, %v425_v35  ;;  %v430_v47 = vrot.slane %v211_v38, %v429_v36  ;;  %v572_v49 = vrot.slane %v211_v38, %v571_v39  ;;  %v576_v50 = vrot.slane %v211_v38, %v575_v40  ;;  %s1356_s24 = scalar_lea.vmem %s1927_s21, 16  ;;  %s1456_s12 = smov [#allocation8]  }
  0x62   : > { %v718_v51 = vrot.slane %v211_v38, %v717_v42  ;;  %v722_v52 = vrot.slane %v211_v38, %v721_v43  ;;  %v312_v53 = vrot.slane %v211_v38, %v311_v44  ;;  %v316_v54 = vrot.slane %v211_v38, %v315_v45  ;;  %p1357_p4 = scmp.ne.s32.totalorder %s1927_s21, %s1356_s24  ;;  %s1360_s22 = sshll.u32 %s1456_s12, 4  ;;  %s1361_s22 = int_to_ptr.vmem [resolvable:$false] %s1360_s22 }
  0x63   : > { %v1720_v56 = vrot.slane %v426_v46, %v425_v35  ;;  %v1722_v57 = vrot.slane %v430_v47, %v425_v35  ;;  %v1727_v59 = vrot.slane %v572_v49, %v571_v39  ;;  %v1729_v60 = vrot.slane %v576_v50, %v571_v39  ;;  %s1362_s27 = scalar_lea.vmem %s1361_s22, 32  ;;  %p1363_p12 = scmp.lt.s32.totalorder %s1927_s21, %s1361_s22 }
  0x64   : > { %1265 = vset.pattern.permute.xlu0 %v1450_v5  ;;  %1260 = vset.pattern.permute.xlu1 %v1448_v0  ;;  %v1731_v61 = vrot.slane %v718_v51, %v717_v42  ;;  %v1733_v62 = vrot.slane %v722_v52, %v717_v42  ;;  %v1735_v63 = vrot.slane %v312_v53, %v311_v44  ;;  %p1358_p6 = pnand %p1357_p4, %p1568_p10  ;;  %p1364_p11 = scmp.lt.s32.totalorder %s1362_s27, %s1356_s24 }
  0x65   : > { %656 = vperm.xlu0 %1265, %v213_v4   ;;  %510 = vperm.xlu1 %1260, %v213_v4  }
  0x66   : > { %p1359_p8 = pneg %p1358_p6  ;;  %p1365_p0 = por %p1364_p11, %p1363_p12 }
  0x68   : > { %p1366_p5 = pnand %p1365_p0, %p1359_p8 }
  0x69   : > { %668 = vperm.xlu0 %1265, %v216_v6   ;;  %1261 = vset.pattern.permute.xlu1 %v1450_v5 }
  0x6a   : > { %652 = vperm.xlu1 %1261, %v212_v2  }
  0x6d   : > { %680 = vperm.xlu0 %1265, %v219_v7  }
  0x6e   : > { %1262 = vset.pattern.permute.xlu1 %v1451_v9 }
  0x6f   : > { %240 = vperm.xlu1 %1262, %v214_v8  }
  0x71   : > { %1275 = vset.pattern.permute.xlu0 %v1449_v1 }
  0x72   : > { %368 = vperm.xlu0 %1275, %v214_v8  }
  0x73   : > { %245 = vperm.xlu1 %1262, %v215_v3  }
  0x76   : > { %380 = vperm.xlu0 %1275, %v217_v10  }
  0x77   : > { %1263 = vset.pattern.permute.xlu1 %v1449_v1 }
  0x78   : > { %372 = vperm.xlu1 %1263, %v215_v3  }
  0x7a   : > { %392 = vperm.xlu0 %1275, %v1643_v11  }
  0x7c   : > { %1264 = vset.pattern.permute.xlu1 %v1448_v0 }
  0x7d   : > { %514 = vperm.xlu1 %1264, %v214_v8  }
  0x7e   : > { %404 = vperm.xlu0 %1275, %v1646_v12  }
  0x81   : > { %1266 = vset.pattern.permute.xlu1 %v1450_v5 }
  0x82   : > { %1282 = vset.pattern.permute.xlu0 %v1451_v9  ;;  %660 = vperm.xlu1 %1266, %v214_v8  }
  0x83   : > { %230 = vperm.xlu0 %1282, %v212_v2   ;;  %v1737_v2 = vrot.slane %v316_v54, %v311_v44 }
  0x86   : > { %664 = vperm.xlu1 %1266, %v215_v3  }
  0x87   : > { %235 = vperm.xlu0 %1282, %v213_v4  }
  0x8a   : > { %1267 = vset.pattern.permute.xlu1 %v1451_v9 }
  0x8b   : > { %255 = vperm.xlu1 %1267, %v217_v10   ;;  %250 = vperm.xlu0 %1282, %v216_v6  }
  0x8f   : > { %1268 = vset.pattern.permute.xlu1 %v1449_v1  ;;  %265 = vperm.xlu0 %1282, %v219_v7  }
  0x90   : > { %376 = vperm.xlu1 %1268, %v216_v6  }
  0x93   : > { %280 = vperm.xlu0 %1282, %v222_v13  }
  0x94   : > { %1269 = vset.pattern.permute.xlu1 %v1448_v0 }
  0x95   : > { %522 = vperm.xlu1 %1269, %v216_v6  }
  0x97   : > { %295 = vperm.xlu0 %1282, %v1656_v15  }
  0x99   : > { %526 = vperm.xlu1 %1269, %v217_v10  }
  0x9b   : > { %1286 = vset.pattern.permute.xlu0 %v1448_v0 }
  0x9c   : > { %530 = vperm.xlu0 %1286, %v218_v16  }
  0x9d   : > { %1270 = vset.pattern.permute.xlu1 %v1450_v5 }
  0x9e   : > { %672 = vperm.xlu1 %1270, %v217_v10  }
  0xa0   : > { %542 = vperm.xlu0 %1286, %v221_v17  }
  0xa2   : > { %1271 = vset.pattern.permute.xlu1 %v1451_v9 }
  0xa3   : > { %260 = vperm.xlu1 %1271, %v218_v16  }
  0xa4   : > { %554 = vperm.xlu0 %1286, %v1661_v18  }
  0xa7   : > { %1272 = vset.pattern.permute.xlu1 %v1449_v1 }
  0xa8   : > { %384 = vperm.xlu1 %1272, %v218_v16   ;;  %1288 = vset.pattern.permute.xlu0 %v1450_v5 }
  0xa9   : > { %692 = vperm.xlu0 %1288, %v222_v13  }
  0xac   : > { %388 = vperm.xlu1 %1272, %v219_v7  }
  0xad   : > { %704 = vperm.xlu0 %1288, %v1656_v15  }
  0xb0   : > { %1273 = vset.pattern.permute.xlu1 %v1448_v0 }
  0xb1   : > { %534 = vperm.xlu1 %1273, %v219_v7   ;;  %1292 = vset.pattern.permute.xlu0 %v1449_v1 }
  0xb2   : > { %416 = vperm.xlu0 %1292, %v1668_v19  }
  0xb5   : > { %1274 = vset.pattern.permute.xlu1 %v1450_v5 }
  0xb6   : > { %676 = vperm.xlu1 %1274, %v218_v16   ;;  %1295 = vset.pattern.permute.xlu0 %v1448_v0 }
  0xb7   : > { %566 = vperm.xlu0 %1295, %v1674_v20  }
  0xba   : > { %1276 = vset.pattern.permute.xlu1 %v1451_v9 }
  0xbb   : > { %270 = vperm.xlu1 %1276, %v1643_v11   ;;  %1297 = vset.pattern.permute.xlu0 %v1450_v5 }
  0xbf   : > { %275 = vperm.xlu1 %1276, %v221_v17  }
  0xc3   : > { %1277 = vset.pattern.permute.xlu1 %v1449_v1 }
  0xc4   : > { %396 = vperm.xlu1 %1277, %v221_v17  }
  0xc8   : > { %1278 = vset.pattern.permute.xlu1 %v1448_v0 }
  0xc9   : > { %538 = vperm.xlu1 %1278, %v1643_v11  }
  0xcd   : > { %1279 = vset.pattern.permute.xlu1 %v1450_v5 }
  0xce   : > { %684 = vperm.xlu1 %1279, %v1643_v11  }
  0xd2   : > { %688 = vperm.xlu1 %1279, %v221_v17  }
  0xd6   : > { %1280 = vset.pattern.permute.xlu1 %v1451_v9 }
  0xd7   : > { %285 = vperm.xlu1 %1280, %v1646_v12  }
  0xdb   : > { %1281 = vset.pattern.permute.xlu1 %v1449_v1  ;;  %v361_v21 = vpop.permute.xlu1 %360  ;;  %v507_v22 = vpop.permute.xlu0 %506 }
  0xdc   : > { %400 = vperm.xlu1 %1281, %v222_v13   ;;  %v441_v3 = vmul.f32 %v1720_v56, %v361_v21  ;;  %v442_v4 = vmul.f32 %v1722_v57, %v361_v21  ;;  %v587_v6 = vmul.f32 %v1727_v59, %v507_v22  ;;  %v588_v7 = vmul.f32 %v1729_v60, %v507_v22 }
  0xdf   : > { %v365_v23 = vpop.permute.xlu1 %364  ;;  %v519_v24 = vpop.permute.xlu0 %518 }
  0xe0   : > { %1283 = vset.pattern.permute.xlu1 %v1448_v0  ;;  %v443_v10 = vmul.f32 %v1720_v56, %v365_v23  ;;  %v444_v11 = vmul.f32 %v1722_v57, %v365_v23 }
  0xe1   : > { %546 = vperm.xlu1 %1283, %v222_v13   ;;  %v594_v13 = vmul.f32 %v1729_v60, %v519_v24 }
  0xe4   : > { %v1690_v25 = vpop.permute.xlu1 %510  ;;  %v1692_v26 = vpop.permute.xlu0 %656 }
  0xe5   : > { %550 = vperm.xlu1 %1283, %v1646_v12   ;;  %v589_v16 = vmul.f32 %v1727_v59, %v1690_v25  ;;  %v590_v17 = vmul.f32 %v1729_v60, %v1690_v25  ;;  %v735_v23 = vmul.f32 %v1731_v61, %v1692_v26  ;;  %v736_v30 = vmul.f32 %v1733_v62, %v1692_v26 }
  0xe8   : > { %v1695_v27 = vpop.permute.xlu0 %668 }
  0xe9   : > { %1284 = vset.pattern.permute.xlu1 %v1450_v5  ;;  %v1698_v28 = vpop.permute.xlu1 %652 }
  0xea   : > { %696 = vperm.xlu1 %1284, %v1646_v12   ;;  %v593_v12 = vmul.f32 %v1727_v59, %v519_v24  ;;  %v733_v32 = vmul.f32 %v1731_v61, %v1698_v28  ;;  %v734_v25 = vmul.f32 %v1733_v62, %v1698_v28 }
  0xec   : > { %v1701_v29 = vpop.permute.xlu0 %680 }
  0xee   : > { %1285 = vset.pattern.permute.xlu1 %v1451_v9  ;;  %v1704_v31 = vpop.permute.xlu1 %240 }
  0xef   : > { %290 = vperm.xlu1 %1285, %v1661_v18   ;;  %v332_v46 = vmul.f32 %v1737_v2, %v1704_v31 }
  0xf1   : > { %v1707_v33 = vpop.permute.xlu0 %368 }
  0xf2   : > { %v1709_v34 = vpop.permute.xlu1 %245  ;;  %v445_v39 = vmul.f32 %v1720_v56, %v1707_v33  ;;  %v446_v40 = vmul.f32 %v1722_v57, %v1707_v33  ;;  %v331_v33 = vmul.f32 %v1735_v63, %v1704_v31 }
  0xf3   : > { %1287 = vset.pattern.permute.xlu1 %v1449_v1  ;;  %v333_v26 = vmul.f32 %v1735_v63, %v1709_v34 }
  0xf4   : > { %408 = vperm.xlu1 %1287, %v1661_v18   ;;  %v477_v52 = vadd.f32 %v445_v39, %v331_v33  ;;  %v478_v53 = vadd.f32 %v446_v40, %v332_v46 }
  0xf5   : > { %v1713_v37 = vpop.permute.xlu0 %380 }
  0xf7   : > { %v373_v41 = vpop.permute.xlu1 %372 }
  0xf8   : > { %412 = vperm.xlu1 %1287, %v1656_v15   ;;  %v447_v24 = vmul.f32 %v1720_v56, %v373_v41 }
  0xf9   : > { %v1717_v48 = vpop.permute.xlu0 %392 }
  0xfa   : > { %v479_v47 = vadd.f32 %v447_v24, %v333_v26 }
  0xfc   : > { %1289 = vset.pattern.permute.xlu1 %v1448_v0  ;;  %v515_v55 = vpop.permute.xlu1 %514 }
  0xfd   : > { %558 = vperm.xlu1 %1289, %v1656_v15   ;;  %v1725_v58 = vpop.permute.xlu0 %404  ;;  %v591_v54 = vmul.f32 %v1727_v59, %v515_v55 }
 0x101   : > { %1290 = vset.pattern.permute.xlu1 %v1450_v5  ;;  %v661_v8 = vpop.permute.xlu1 %660 }
 0x102   : > { %v231_v15 = vpop.permute.xlu0 %230  ;;  %700 = vperm.xlu1 %1290, %v1661_v18   ;;  %v448_v18 = vmul.f32 %v1722_v57, %v373_v41  ;;  %v334_v41 = vmul.f32 %v1737_v2, %v1709_v34  ;;  %v737_v31 = vmul.f32 %v1731_v61, %v661_v8 }
 0x103   : > { %v327_v21 = vmul.f32 %v1735_v63, %v231_v15  ;;  %v328_v22 = vmul.f32 %v1737_v2, %v231_v15 }
 0x104   : > { %v480_v49 = vadd.f32 %v448_v18, %v334_v41 }
 0x105   : > { %v473_v35 = vadd.f32 %v441_v3, %v327_v21  ;;  %v474_v36 = vadd.f32 %v442_v4, %v328_v22  ;;  %v665_v38 = vpop.permute.xlu1 %664  ;;  %v592_v3 = vmul.f32 %v1729_v60, %v515_v55  ;;  %v623_v55 = vadd.f32 %v591_v54, %v477_v52 }
 0x106   : > { %v236_v42 = vpop.permute.xlu0 %235  ;;  %1291 = vset.pattern.permute.xlu1 %v1451_v9  ;;  %v626_v22 = vadd.f32 %v594_v13, %v480_v49  ;;  %v741_v49 = vmul.f32 %v1731_v61, %v1695_v27 }
 0x107   : > { %v619_v43 = vadd.f32 %v587_v6, %v473_v35  ;;  %v620_v28 = vadd.f32 %v588_v7, %v474_v36  ;;  %v329_v44 = vmul.f32 %v1735_v63, %v236_v42  ;;  %v330_v45 = vmul.f32 %v1737_v2, %v236_v42  ;;  %300 = vperm.xlu1 %1291, %v1668_v19  }
 0x108   : > { %v739_v6 = vmul.f32 %v1731_v61, %v665_v38  ;;  %v740_v7 = vmul.f32 %v1733_v62, %v665_v38  ;;  %v624_v35 = vadd.f32 %v592_v3, %v478_v53  ;;  %v769_v26 = vadd.f32 %v737_v31, %v623_v55 }
 0x109   : > { %v475_v34 = vadd.f32 %v443_v10, %v329_v44  ;;  %v476_v50 = vadd.f32 %v444_v11, %v330_v45  ;;  %v765_v51 = vadd.f32 %v733_v32, %v619_v43  ;;  %v766_v9 = vadd.f32 %v734_v25, %v620_v28 }
 0x10a   : > { %v256_v4 = vpop.permute.xlu1 %255  ;;  %v738_v10 = vmul.f32 %v1733_v62, %v661_v8  ;;  %v625_v11 = vadd.f32 %v593_v12, %v479_v47  ;;  %v772_v39 = vadd.f32 %v740_v7, %v626_v22  ;;  %v251_v40 = vpop.permute.xlu0 %250  ;;  %v801_v45 = vmax.f32 %v769_v26, 0.0 }
 0x10b   : > { %v621_v15 = vadd.f32 %v589_v16, %v475_v34  ;;  %v622_v21 = vadd.f32 %v590_v17, %v476_v50  ;;  %305 = vperm.xlu1 %1291, %v1674_v20   ;;  %v797_v32 = vmax.f32 %v765_v51, 0.0  ;;  %v798_v25 = vmax.f32 %v766_v9, 0.0 }
 0x10c   : > { %v771_v36 = vadd.f32 %v739_v6, %v625_v11  ;;  %v770_v8 = vadd.f32 %v738_v10, %v624_v35  ;;  %v804_v28 = vmax.f32 %v772_v39, 0.0  ;;  %v451_v51 = vmul.f32 %v1720_v56, %v1713_v37 }
 0x10d   : > { %v767_v24 = vadd.f32 %v735_v23, %v621_v15  ;;  %v768_v18 = vadd.f32 %v736_v30, %v622_v21  ;;  %v829_v12 = vadd.f32 %v798_v25, %v797_v32  ;;  %v335_v23 = vmul.f32 %v1735_v63, %v251_v40 }
 0x10e   : > { %v336_v30 = vmul.f32 %v1737_v2, %v251_v40  ;;  %v803_v43 = vmax.f32 %v771_v36, 0.0  ;;  %v802_v33 = vmax.f32 %v770_v8, 0.0  ;;  %v337_v9 = vmul.f32 %v1735_v63, %v256_v4 }
 0x10f   : > { %1293 = vset.pattern.permute.xlu1 %v1449_v1  ;;  %v377_v16 = vpop.permute.xlu1 %376  ;;  %v799_v17 = vmax.f32 %v767_v24, 0.0  ;;  %v800_v38 = vmax.f32 %v768_v18, 0.0  ;;  %v452_v53 = vmul.f32 %v1722_v57, %v1713_v37  ;;  %v338_v54 = vmul.f32 %v1737_v2, %v256_v4  ;;  %v266_v18 = vpop.permute.xlu0 %265 }
 0x110   : > { %420 = vperm.xlu1 %1293, %v1674_v20   ;;  %v449_v41 = vmul.f32 %v1720_v56, %v377_v16  ;;  %v450_v42 = vmul.f32 %v1722_v57, %v377_v16  ;;  %v832_v52 = vadd.f32 %v804_v28, %v803_v43  ;;  %v831_v21 = vadd.f32 %v802_v33, %v801_v45 }
 0x111   : > { %v830_v13 = vadd.f32 %v800_v38, %v799_v17  ;;  %v483_v31 = vadd.f32 %v451_v51, %v337_v9  ;;  %v484_v11 = vadd.f32 %v452_v53, %v338_v54  ;;  %v747_v45 = vmul.f32 %v1731_v61, %v1701_v29 }
 0x112   : > { %v481_v34 = vadd.f32 %v449_v41, %v335_v23  ;;  %v482_v50 = vadd.f32 %v450_v42, %v336_v30  ;;  %v1155_v10 = vpack.c.bf16 %v832_v52, %v831_v21  ;;  %v341_v30 = vmul.f32 %v1735_v63, %v266_v18 }
 0x113   : > { %v1152_v1 = vpack.c.bf16 %v830_v13, %v829_v12  ;;  %v1817_v17 = vpop.permute.xlu0 %280  ;;  %v342_v41 = vmul.f32 %v1737_v2, %v266_v18  ;;  %v748_v33 = vmul.f32 %v1733_v62, %v1701_v29 }
 0x114   : > { %1294 = vset.pattern.permute.xlu1 %v1448_v0  ;;  %v523_v44 = vpop.permute.xlu1 %522  ;;  %v742_v0 = vmul.f32 %v1733_v62, %v1695_v27 }
 0x115   : > { %v595_v46 = vmul.f32 %v1727_v59, %v523_v44  ;;  %v596_v47 = vmul.f32 %v1729_v60, %v523_v44  ;;  %562 = vperm.xlu1 %1294, %v1668_v19   ;;  %1153 = vmatpush3.bf16.xpose.msra.mxu0 %v1152_v1 }
 0x116   : > { %1154 = vmatprep.subr.bf16.mxu0 %v1452_v14 }
 0x117   : > { %v627_v3 = vadd.f32 %v595_v46, %v481_v34  ;;  %v628_v6 = vadd.f32 %v596_v47, %v482_v50  ;;  %v1819_v13 = vpop.permute.xlu0 %295 }
 0x118   : > { %v527_v7 = vpop.permute.xlu1 %526 }
 0x119   : > { %v597_v15 = vmul.f32 %v1727_v59, %v527_v7  ;;  %1296 = vset.pattern.permute.xlu1 %v1450_v5  ;;  %v598_v27 = vmul.f32 %v1729_v60, %v527_v7  ;;  %v773_v22 = vadd.f32 %v741_v49, %v627_v3  ;;  %v774_v24 = vadd.f32 %v742_v0, %v628_v6 }
 0x11a   : > { %708 = vperm.xlu1 %1296, %v1668_v19  }
 0x11b   : > { %v629_v37 = vadd.f32 %v597_v15, %v483_v31  ;;  %v630_v32 = vadd.f32 %v598_v27, %v484_v11  ;;  %v805_v5 = vmax.f32 %v773_v22, 0.0  ;;  %v806_v19 = vmax.f32 %v774_v24, 0.0  ;;  %v531_v44 = vpop.permute.xlu0 %530 }
 0x11c   : > { %v599_v53 = vmul.f32 %v1727_v59, %v531_v44  ;;  %v600_v54 = vmul.f32 %v1729_v60, %v531_v44 }
 0x11d   : > { %v673_v4 = vpop.permute.xlu1 %672  ;;  %1156 = vmatpush3.bf16.xpose.msra.mxu0 %v1155_v10  ;;  %v833_v38 = vadd.f32 %v806_v19, %v805_v5 }
 0x11e   : > { %v743_v25 = vmul.f32 %v1731_v61, %v673_v4  ;;  %v744_v55 = vmul.f32 %v1733_v62, %v673_v4  ;;  %712 = vperm.xlu1 %1296, %v1674_v20   ;;  %1157 = vmatprep.subr.bf16.mxu0 %v1452_v14  ;;  %v1454_v20 = vmov 0.0  }
 0x11f   : > { %1148 = vmatprep.mubr.msk.f32.mxu0 %vm1453_vm0, %v1454_v20 }
 0x120   : > { %v775_v35 = vadd.f32 %v743_v25, %v629_v37  ;;  %v776_v36 = vadd.f32 %v744_v55, %v630_v32 }
 0x122   : > { %v807_v39 = vmax.f32 %v775_v35, 0.0  ;;  %v808_v40 = vmax.f32 %v776_v36, 0.0  ;;  %v261_v16 = vpop.permute.xlu1 %260  ;;  %v457_v36 = vmul.f32 %v1720_v56, %v1717_v48 }
 0x123   : > { %v339_v46 = vmul.f32 %v1735_v63, %v261_v16  ;;  %v340_v47 = vmul.f32 %v1737_v2, %v261_v16 }
 0x124   : > { %v834_v26 = vadd.f32 %v808_v40, %v807_v39  ;;  %v458_v39 = vmul.f32 %v1722_v57, %v1717_v48 }
 0x126   : > { %v1158_v8 = vpack.c.bf16 %v834_v26, %v833_v38 }
 0x127   : > { %v385_v12 = vpop.permute.xlu1 %384 }
 0x128   : > { %1159 = vmatpush3.bf16.xpose.msra.mxu0 %v1158_v8  ;;  %v453_v28 = vmul.f32 %v1720_v56, %v385_v12  ;;  %v454_v1 = vmul.f32 %v1722_v57, %v385_v12  ;;  %v543_v12 = vpop.permute.xlu0 %542 }
 0x129   : > { %1160 = vmatprep.subr.bf16.mxu0 %v1452_v14  ;;  %v606_v44 = vmul.f32 %v1729_v60, %v543_v12 }
 0x12a   : > { %v485_v9 = vadd.f32 %v453_v28, %v339_v46  ;;  %v486_v52 = vadd.f32 %v454_v1, %v340_v47  ;;  %v605_v1 = vmul.f32 %v1727_v59, %v543_v12  ;;  %v464_v12 = vmul.f32 %v1722_v57, %v1725_v58 }
 0x12b   : > { %v389_v23 = vpop.permute.xlu1 %388 }
 0x12c   : > { %v455_v42 = vmul.f32 %v1720_v56, %v389_v23  ;;  %v456_v43 = vmul.f32 %v1722_v57, %v389_v23  ;;  %v631_v21 = vadd.f32 %v599_v53, %v485_v9  ;;  %v632_v27 = vadd.f32 %v600_v54, %v486_v52 }
 0x12e   : > { %v487_v34 = vadd.f32 %v455_v42, %v341_v30  ;;  %v488_v50 = vadd.f32 %v456_v43, %v342_v41 }
 0x130   : > { %v535_v49 = vpop.permute.xlu1 %534 }
 0x131   : > { %v601_v0 = vmul.f32 %v1727_v59, %v535_v49  ;;  %v602_v51 = vmul.f32 %v1729_v60, %v535_v49 }
 0x133   : > { %v633_v3 = vadd.f32 %v601_v0, %v487_v34  ;;  %v634_v6 = vadd.f32 %v602_v51, %v488_v50 }
 0x135   : > { %v779_v29 = vadd.f32 %v747_v45, %v633_v3  ;;  %v780_v7 = vadd.f32 %v748_v33, %v634_v6  ;;  %v677_v15 = vpop.permute.xlu1 %676 }
 0x136   : > { %v745_v31 = vmul.f32 %v1731_v61, %v677_v15  ;;  %v746_v10 = vmul.f32 %v1733_v62, %v677_v15 }
 0x137   : > { %v811_v11 = vmax.f32 %v779_v29, 0.0  ;;  %v812_v22 = vmax.f32 %v780_v7, 0.0 }
 0x138   : > { %v777_v24 = vadd.f32 %v745_v31, %v631_v21  ;;  %v778_v37 = vadd.f32 %v746_v10, %v632_v27 }
 0x139   : > { %v836_v55 = vadd.f32 %v812_v22, %v811_v11  ;;  %v1859_v11 = vpop.permute.xlu0 %554 }
 0x13a   : > { %v809_v18 = vmax.f32 %v777_v24, 0.0  ;;  %v810_v4 = vmax.f32 %v778_v37, 0.0  ;;  %v271_v32 = vpop.permute.xlu1 %270  ;;  %v347_v24 = vmul.f32 %v1735_v63, %v1817_v17  ;;  %v348_v37 = vmul.f32 %v1737_v2, %v1817_v17 }
 0x13b   : > { %v343_v40 = vmul.f32 %v1735_v63, %v271_v32  ;;  %v344_v16 = vmul.f32 %v1737_v2, %v271_v32 }
 0x13c   : > { %v835_v25 = vadd.f32 %v810_v4, %v809_v18 }
 0x13d   : > { %v489_v42 = vadd.f32 %v457_v36, %v343_v40  ;;  %v490_v48 = vadd.f32 %v458_v39, %v344_v16 }
 0x13e   : > { %v276_v5 = vpop.permute.xlu1 %275  ;;  %v1161_v19 = vpack.c.bf16 %v836_v55, %v835_v25  ;;  %v693_v25 = vpop.permute.xlu0 %692 }
 0x13f   : > { %v345_v30 = vmul.f32 %v1735_v63, %v276_v5  ;;  %v346_v41 = vmul.f32 %v1737_v2, %v276_v5  ;;  %v753_v36 = vmul.f32 %v1731_v61, %v693_v25  ;;  %v754_v39 = vmul.f32 %v1733_v62, %v693_v25 }
 0x140   : > { %1162 = vmatpush3.bf16.xpose.msra.mxu0 %v1161_v19  ;;  %v611_v25 = vmul.f32 %v1727_v59, %v1859_v11 }
 0x141   : > { %1163 = vmatprep.subr.bf16.mxu0 %v1452_v14 }
 0x143   : > { %v397_v35 = vpop.permute.xlu1 %396 }
 0x144   : > { %v459_v26 = vmul.f32 %v1720_v56, %v397_v35  ;;  %v460_v8 = vmul.f32 %v1722_v57, %v397_v35 }
 0x146   : > { %v491_v43 = vadd.f32 %v459_v26, %v345_v30  ;;  %v492_v28 = vadd.f32 %v460_v8, %v346_v41  ;;  %v463_v8 = vmul.f32 %v1720_v56, %v1725_v58 }
 0x148   : > { %v539_v38 = vpop.permute.xlu1 %538  ;;  %v637_v51 = vadd.f32 %v605_v1, %v491_v43  ;;  %v638_v9 = vadd.f32 %v606_v44, %v492_v28 }
 0x149   : > { %v603_v20 = vmul.f32 %v1727_v59, %v539_v38  ;;  %v604_v23 = vmul.f32 %v1729_v60, %v539_v38 }
 0x14b   : > { %v635_v33 = vadd.f32 %v603_v20, %v489_v42  ;;  %v636_v46 = vadd.f32 %v604_v23, %v490_v48 }
 0x14d   : > { %v685_v45 = vpop.permute.xlu1 %684 }
 0x14e   : > { %v749_v47 = vmul.f32 %v1731_v61, %v685_v45  ;;  %v750_v49 = vmul.f32 %v1733_v62, %v685_v45 }
 0x150   : > { %v781_v34 = vadd.f32 %v749_v47, %v635_v33  ;;  %v782_v50 = vadd.f32 %v750_v49, %v636_v46 }
 0x151   : > { %v689_v0 = vpop.permute.xlu1 %688 }
 0x152   : > { %v751_v52 = vmul.f32 %v1731_v61, %v689_v0  ;;  %v752_v53 = vmul.f32 %v1733_v62, %v689_v0  ;;  %v813_v54 = vmax.f32 %v781_v34, 0.0  ;;  %v814_v3 = vmax.f32 %v782_v50, 0.0 }
 0x154   : > { %v783_v6 = vadd.f32 %v751_v52, %v637_v51  ;;  %v784_v29 = vadd.f32 %v752_v53, %v638_v9  ;;  %v837_v27 = vadd.f32 %v814_v3, %v813_v54 }
 0x156   : > { %v815_v7 = vmax.f32 %v783_v6, 0.0  ;;  %v816_v15 = vmax.f32 %v784_v29, 0.0  ;;  %v286_v21 = vpop.permute.xlu1 %285  ;;  %v705_v6 = vpop.permute.xlu0 %704 }
 0x157   : > { %v349_v40 = vmul.f32 %v1735_v63, %v286_v21  ;;  %v350_v17 = vmul.f32 %v1737_v2, %v286_v21  ;;  %v354_v21 = vmul.f32 %v1737_v2, %v1819_v13 }
 0x158   : > { %v838_v31 = vadd.f32 %v816_v15, %v815_v7  ;;  %v353_v15 = vmul.f32 %v1735_v63, %v1819_v13  ;;  %v612_v13 = vmul.f32 %v1729_v60, %v1859_v11 }
 0x159   : > { %v495_v30 = vadd.f32 %v463_v8, %v349_v40  ;;  %v496_v41 = vadd.f32 %v464_v12, %v350_v17 }
 0x15a   : > { %v1164_v10 = vpack.c.bf16 %v838_v31, %v837_v27 }
 0x15b   : > { %v401_v22 = vpop.permute.xlu1 %400 }
 0x15c   : > { %1165 = vmatpush3.bf16.xpose.msra.mxu0 %v1164_v10  ;;  %v461_v18 = vmul.f32 %v1720_v56, %v401_v22  ;;  %v462_v4 = vmul.f32 %v1722_v57, %v401_v22  ;;  %v759_v22 = vmul.f32 %v1731_v61, %v705_v6 }
 0x15d   : > { %1166 = vmatprep.subr.bf16.mxu0 %v1452_v14 }
 0x15e   : > { %v493_v19 = vadd.f32 %v461_v18, %v347_v24  ;;  %v494_v35 = vadd.f32 %v462_v4, %v348_v37  ;;  %v760_v24 = vmul.f32 %v1733_v62, %v705_v6 }
 0x160   : > { %v547_v32 = vpop.permute.xlu1 %546 }
 0x161   : > { %v607_v55 = vmul.f32 %v1727_v59, %v547_v32  ;;  %v608_v5 = vmul.f32 %v1729_v60, %v547_v32 }
 0x163   : > { %v639_v16 = vadd.f32 %v607_v55, %v493_v19  ;;  %v640_v38 = vadd.f32 %v608_v5, %v494_v35 }
 0x164   : > { %v551_v26 = vpop.permute.xlu1 %550 }
 0x165   : > { %v609_v20 = vmul.f32 %v1727_v59, %v551_v26  ;;  %v610_v23 = vmul.f32 %v1729_v60, %v551_v26  ;;  %v785_v42 = vadd.f32 %v753_v36, %v639_v16  ;;  %v786_v48 = vadd.f32 %v754_v39, %v640_v38 }
 0x167   : > { %v641_v28 = vadd.f32 %v609_v20, %v495_v30  ;;  %v642_v1 = vadd.f32 %v610_v23, %v496_v41  ;;  %v817_v33 = vmax.f32 %v785_v42, 0.0  ;;  %v818_v46 = vmax.f32 %v786_v48, 0.0 }
 0x169   : > { %v697_v43 = vpop.permute.xlu1 %696  ;;  %v839_v0 = vadd.f32 %v818_v46, %v817_v33 }
 0x16a   : > { %v755_v44 = vmul.f32 %v1731_v61, %v697_v43  ;;  %v756_v45 = vmul.f32 %v1733_v62, %v697_v43 }
 0x16c   : > { %v787_v47 = vadd.f32 %v755_v44, %v641_v28  ;;  %v788_v49 = vadd.f32 %v756_v45, %v642_v1  ;;  %v417_v44 = vpop.permute.xlu0 %416 }
 0x16d   : > { %v469_v45 = vmul.f32 %v1720_v56, %v417_v44  ;;  %v470_v33 = vmul.f32 %v1722_v57, %v417_v44 }
 0x16e   : > { %v819_v58 = vmax.f32 %v787_v47, 0.0  ;;  %v820_v34 = vmax.f32 %v788_v49, 0.0  ;;  %v291_v50 = vpop.permute.xlu1 %290 }
 0x16f   : > { %v351_v27 = vmul.f32 %v1735_v63, %v291_v50  ;;  %v352_v31 = vmul.f32 %v1737_v2, %v291_v50 }
 0x170   : > { %v840_v51 = vadd.f32 %v820_v34, %v819_v58  ;;  %v567_v50 = vpop.permute.xlu0 %566 }
 0x171   : > { %v617_v6 = vmul.f32 %v1727_v59, %v567_v50 }
 0x172   : > { %v1167_v9 = vpack.c.bf16 %v840_v51, %v839_v0 }
 0x173   : > { %v409_v52 = vpop.permute.xlu1 %408 }
 0x174   : > { %1168 = vmatpush3.bf16.xpose.msra.mxu0 %v1167_v9  ;;  %v465_v29 = vmul.f32 %v1720_v56, %v409_v52  ;;  %v466_v7 = vmul.f32 %v1722_v57, %v409_v52 }
 0x175   : > { %1169 = vmatprep.subr.bf16.mxu0 %v1452_v14 }
 0x176   : > { %v497_v55 = vadd.f32 %v465_v29, %v351_v27  ;;  %v498_v5 = vadd.f32 %v466_v7, %v352_v31  ;;  %v618_v29 = vmul.f32 %v1729_v60, %v567_v50 }
 0x177   : > { %v413_v53 = vpop.permute.xlu1 %412 }
 0x178   : > { %v467_v54 = vmul.f32 %v1720_v56, %v413_v53  ;;  %v468_v3 = vmul.f32 %v1722_v57, %v413_v53  ;;  %v643_v17 = vadd.f32 %v611_v25, %v497_v55  ;;  %v644_v16 = vadd.f32 %v612_v13, %v498_v5 }
 0x179   : > { %v1455_v5 = vmov 1.0  }
 0x17a   : > { %v499_v37 = vadd.f32 %v467_v54, %v353_v15  ;;  %v500_v18 = vadd.f32 %v468_v3, %v354_v21 }
 0x17c   : > { %v559_v10 = vpop.permute.xlu1 %558 }
 0x17d   : > { %v613_v4 = vmul.f32 %v1727_v59, %v559_v10  ;;  %v614_v32 = vmul.f32 %v1729_v60, %v559_v10 }
 0x17f   : > { %v645_v19 = vadd.f32 %v613_v4, %v499_v37  ;;  %v646_v35 = vadd.f32 %v614_v32, %v500_v18 }
 0x181   : > { %v791_v36 = vadd.f32 %v759_v22, %v645_v19  ;;  %v792_v39 = vadd.f32 %v760_v24, %v646_v35  ;;  %v701_v40 = vpop.permute.xlu1 %700 }
 0x182   : > { %v757_v38 = vmul.f32 %v1731_v61, %v701_v40  ;;  %v758_v26 = vmul.f32 %v1733_v62, %v701_v40 }
 0x183   : > { %v823_v8 = vmax.f32 %v791_v36, 0.0  ;;  %v824_v12 = vmax.f32 %v792_v39, 0.0 }
 0x184   : > { %v789_v20 = vadd.f32 %v757_v38, %v643_v17  ;;  %v790_v23 = vadd.f32 %v758_v26, %v644_v16 }
 0x185   : > { %v842_v48 = vadd.f32 %v824_v12, %v823_v8 }
 0x186   : > { %v821_v30 = vmax.f32 %v789_v20, 0.0  ;;  %v822_v41 = vmax.f32 %v790_v23, 0.0  ;;  %v301_v11 = vpop.permute.xlu1 %300 }
 0x187   : > { %v355_v46 = vmul.f32 %v1735_v63, %v301_v11  ;;  %v356_v47 = vmul.f32 %v1737_v2, %v301_v11 }
 0x188   : > { %v841_v42 = vadd.f32 %v822_v41, %v821_v30 }
 0x189   : > { %v501_v52 = vadd.f32 %v469_v45, %v355_v46  ;;  %v502_v53 = vadd.f32 %v470_v33, %v356_v47 }
 0x18a   : > { %v306_v43 = vpop.permute.xlu1 %305  ;;  %v1170_v28 = vpack.c.bf16 %v842_v48, %v841_v42 }
 0x18b   : > { %v357_v51 = vmul.f32 %v1735_v63, %v306_v43  ;;  %v358_v9 = vmul.f32 %v1737_v2, %v306_v43 }
 0x18c   : > { %1171 = vmatpush3.bf16.xpose.msra.mxu0 %v1170_v28 }
 0x18d   : > { %1172 = vmatprep.subr.bf16.mxu0 %v1452_v14 }
 0x18f   : > { %v421_v1 = vpop.permute.xlu1 %420 }
 0x190   : > { %v471_v58 = vmul.f32 %v1720_v56, %v421_v1  ;;  %v472_v34 = vmul.f32 %v1722_v57, %v421_v1 }
 0x192   : > { %v503_v54 = vadd.f32 %v471_v58, %v357_v51  ;;  %v504_v3 = vadd.f32 %v472_v34, %v358_v9 }
 0x194   : > { %v563_v49 = vpop.permute.xlu1 %562  ;;  %v649_v10 = vadd.f32 %v617_v6, %v503_v54  ;;  %v650_v2 = vadd.f32 %v618_v29, %v504_v3 }
 0x195   : > { %v615_v0 = vmul.f32 %v1727_v59, %v563_v49  ;;  %v616_v14 = vmul.f32 %v1729_v60, %v563_v49 }
 0x197   : > { %v647_v7 = vadd.f32 %v615_v0, %v501_v52  ;;  %v648_v57 = vadd.f32 %v616_v14, %v502_v53 }
 0x199   : > { %v709_v56 = vpop.permute.xlu1 %708 }
 0x19a   : > { %v761_v15 = vmul.f32 %v1731_v61, %v709_v56  ;;  %v762_v21 = vmul.f32 %v1733_v62, %v709_v56 }
 0x19c   : > { %v793_v27 = vadd.f32 %v761_v15, %v647_v7  ;;  %v794_v31 = vadd.f32 %v762_v21, %v648_v57 }
 0x19d   : > { %v713_v63 = vpop.permute.xlu1 %712 }
 0x19e   : > { %v763_v22 = vmul.f32 %v1731_v61, %v713_v63  ;;  %v764_v59 = vmul.f32 %v1733_v62, %v713_v63  ;;  %v825_v24 = vmax.f32 %v793_v27, 0.0  ;;  %v826_v60 = vmax.f32 %v794_v31, 0.0 }
 0x1a0   : > { %v795_v37 = vadd.f32 %v763_v22, %v649_v10  ;;  %v796_v18 = vadd.f32 %v764_v59, %v650_v2  ;;  %v843_v13 = vadd.f32 %v826_v60, %v825_v24 }
 0x1a2   : > { %v827_v4 = vmax.f32 %v795_v37, 0.0  ;;  %v828_v32 = vmax.f32 %v796_v18, 0.0 }
 0x1a4   : > { %v844_v25 = vadd.f32 %v828_v32, %v827_v4 }
 0x1a6   : > { %v1173_v55 = vpack.c.bf16 %v844_v25, %v843_v13 }
 0x1a8   : > { %1174 = vmatpush3.bf16.xpose.msra.mxu0 %v1173_v55 }
 0x1af   : > { %1149 = vmatmul.mubr.f32.vlgmr.msra.gmra.mrb[0].mxu0 %v1455_v5 }
 0x282   : > { %v978_v61 = vpop.f32.mrb[0].mxu0 }
 0x283   : > { %v982_v19 = vmul.f32 0.00390625, %v978_v61  ;;  %v1150_v62 = vpop.f32.mrb[1].mxu0 }
 0x285   : > { %983 = vst [vmem:[%s189_s19] sm:$0x1] %v982_v19 }
 0x286   : > { %1369 = shalt.err (!%p1366_p5)
}
 0x287   : > { %s1370_s23 = scalar_lea.hbm %s1925_s6, 16  ;;  %s1374_s3 = scalar_lea.hbm %s1976_s2, 32 }
 0x288   : > { %p1371_p9 = scmp.ne.s32.totalorder %s1925_s6, %s1370_s23  ;;  %p1375_p7 = scmp.lt.u32.totalorder %s1925_s6, %s1976_s2 }
 0x289   : > { %p1376_p3 = scmp.lt.u32.totalorder %s1374_s3, %s1370_s23  ;;  %p1378_p4 = scmp.lt.u32.totalorder %s1370_s23, %s1925_s6 }
 0x28a   : > { %p1372_p1 = pnand %p1371_p9, %p1568_p10 }
 0x28b   : > { %p1377_p13 = por %p1376_p3, %p1375_p7 }
 0x28c   : > { %p1373_p2 = pneg %p1372_p1 }
 0x28d   : > { %p1379_p6 = por %p1378_p4, %p1377_p13 }
 0x28f   : > { %p1380_p8 = pnand %p1379_p6, %p1373_p2 }
 0x291   : > { %1383 = shalt.err (!%p1380_p8)
}
 0x292   : > { %1181 = dma.vmem_to_hbm [thread:$0]  (%p1568_p10), %s1927_s21, 16, %s1925_s6, %s985_s7  }
 0x293 PF: > { %s1009_s15 = sand.u32 1, %s1422_s9   ;;  %p1994_p12 = scmp.ne.s32.totalorder %s1984_s20, 0 }
 0x294   : > { %p1995_p11 = scmp.ge.s32.totalorder %s1442_s14, 2  ;;  %s1010_s16 = scalar_lea.sflag [#allocation5], %s1009_s15 }
 0x296   : > { %p1192_p0 = pnand %p1995_p11, %p1994_p12 }
 0x298   : > { %1417 = dma.done.wait (!%p1192_p0), %s1010_s16, 16  }
 0x299   : > { %1419 = vsyncadd (!%p1192_p0), %s1010_s16, 4294967280  ;;  %s19_s14 = sadd.s32 1, %s1442_s14   ;;  %s1996_s9 = smov %s1426_s10 }
 0x29a   : > { %p16_p5 = scmp.ge.s32.totalorder %s19_s14, 4   ;;  %s1997_s10 = smov %s1430_s11 }
 0x29b   : > { %s1998_s11 = smov %s1577_s28  ;;  %s1999_s12 = smov %s1438_s13 }
 0x29c   : > { %s2000_s13 = smov %s2002_s25  ;;  %18 = sbr.rel (!%p16_p5) target bundleno = 7 (0x7), region = 85 }
 0x2a3   :  { %1014 = vsyncpa [#allocation4], 1 }
 0x2a4   :  { %1016 = vsyncpa [#allocation4 + $0x1], 1 }
 0x2a5   :  { %1017 = vsyncpa [#allocation7], 1 }
 0x2a6   :  { %1018 = vsyncpa [#allocation5], 1 }
 0x2a7   :  { %1020 = vsyncpa [#allocation5 + $0x1], 1 }

</bundles_post_ra>
